<compile_context>
chip_gen: v7x
topology: tpu7x:2x2x1
jax: 0.10.0
libtpu: 0.0.40
codegen_flags: <defaults>
</compile_context>

<pallas_src>
import jax
import jax.numpy as jnp
from jax.experimental import pallas as pl
from jax.experimental.pallas import tpu as pltpu

_LANE = 128
_RESIDENT_VMEM_BUDGET = 24 * 1024 * 1024   # conservative; fits v5e/v6e/v7x
_VMEM_LIMIT_BYTES = 48 * 1024 * 1024
_FAST_PATH_MACS = 1 << 20


def _round_up(x, m):
    return ((x + m - 1) // m) * m


def _sublane(dtype):
    # Packed-sublane tile height: (8,128) f32, (16,128) bf16, (32,128) 8-bit.
    return {4: 8, 2: 16, 1: 32}[jnp.dtype(dtype).itemsize]


def _dot_f32(x_ref, w_ref):
    x = x_ref[...]
    w = w_ref[...]
    if x.dtype != w.dtype:
        # Compute in the (narrower) weight dtype; accumulate in f32 on the MXU.
        x = x.astype(w.dtype)
    return jnp.dot(x, w, preferred_element_type=jnp.float32)


# --- kernels -----------------------------------------------------------------

def _resident_kernel(x_ref, w_ref, b_ref, o_ref):
    # Whole weight resident in VMEM (constant block index): one dot per M tile,
    # bias add fused in the epilogue on the VPU under MXU slack.
    o_ref[...] = (_dot_f32(x_ref, w_ref) + b_ref[...]).astype(o_ref.dtype)


def _ktiled_f32out_kernel(x_ref, w_ref, b_ref, o_ref):
    # f32 output block doubles as the accumulator (its block index is constant
    # across the K axis), so no scratch and no extra epilogue copy.
    k = pl.program_id(1)

    @pl.when(k == 0)
    def _():
        o_ref[...] = jnp.broadcast_to(b_ref[...], o_ref.shape)

    o_ref[...] += _dot_f32(x_ref, w_ref)


def _ktiled_acc_kernel(x_ref, w_ref, b_ref, o_ref, acc_ref):
    k = pl.program_id(1)

    @pl.when(k == 0)
    def _():
        acc_ref[...] = jnp.zeros_like(acc_ref)

    acc_ref[...] += _dot_f32(x_ref, w_ref)

    @pl.when(k == pl.num_programs(1) - 1)
    def _():
        o_ref[...] = (acc_ref[...] + b_ref[...]).astype(o_ref.dtype)


# --- parameter prep (one-time, out of the hot path) ---------------------------

def prepare_linear_params(w, b, *, compute_dtype=jnp.bfloat16):
    """nn.Linear weight [C, D] -> transposed, lane-dense padded [D_pad, C_pad].

    Padding is derived *here* (multiples of 128) so the kernel's tiling can
    never mismatch the caller.  Default bf16 weight halves weight HBM traffic;
    accumulation stays f32 inside the kernel.
    """
    C, D = w.shape
    d_pad = _round_up(D, _LANE)
    c_pad = _round_up(C, _LANE)
    dt = w.dtype if compute_dtype is None else compute_dtype
    w_t = jnp.zeros((d_pad, c_pad), dtype=dt).at[:D, :C].set(w.T.astype(dt))
    b_p = jnp.zeros((1, c_pad), dtype=jnp.float32).at[0, :C].set(
        b.astype(jnp.float32))
    return w_t, b_p


# --- forward pass -------------------------------------------------------------

def _choose_tm(B, sub):
    if B >= 1024:
        return 512           # bigger DMAs per step -> closer to HBM roofline
    if B >= 512:
        return 256
    if B >= 256:
        return 128           # >= 2 M steps so both v7x TensorCores get work
    return _round_up(B, sub)


def logistic_regression(x, w_t_pad, b_pad, num_classes, *, out_dtype=None,
                        allow_fast_path=True):
    """Forward pass y = x @ W^T + b.

    x:        [B, D]
    w_t_pad:  [D_pad, C_pad] pre-transposed / padded weight (prepare_linear_params)
    b_pad:    [1, C_pad] f32 bias
    """
    B, D = x.shape
    D_pad, C_pad = w_t_pad.shape
    out_dtype = x.dtype if out_dtype is None else out_dtype

    # Tiny problems: the pallas_call launch, padding copy and output slice each
    # cost more than the entire matmul — just use XLA directly.
    if allow_fast_path and B * D * max(num_classes, 1) < _FAST_PATH_MACS:
        w_f32 = w_t_pad[:D, :num_classes].astype(jnp.float32)
        y = x.astype(jnp.float32) @ w_f32 + b_pad[0, :num_classes]
        return y.astype(out_dtype)

    w_item = jnp.dtype(w_t_pad.dtype).itemsize
    out_item = jnp.dtype(out_dtype).itemsize

    TM = _choose_tm(B, max(_sublane(w_t_pad.dtype), 8))
    B_pad = _round_up(B, TM)

    # Only materialize a padded copy of x when padding is actually required;
    # the bf16 cast rides on that same copy.  Otherwise x streams straight
    # from HBM in its own dtype (no extra pass) and is cast per-tile in VMEM.
    if (B_pad != B) or (D_pad != D):
        x_in = (jnp.zeros((B_pad, D_pad), dtype=w_t_pad.dtype)
                .at[:B, :D].set(x.astype(w_t_pad.dtype)))
    else:
        x_in = x
    x_item = jnp.dtype(x_in.dtype).itemsize

    def vmem_estimate(tk, with_acc):
        return (2 * TM * tk * x_item            # x tile (double-buffered)
                + 2 * tk * C_pad * w_item       # weight tile
                + 2 * TM * C_pad * out_item     # output tile
                + 2 * C_pad * 4                 # bias
                + (TM * C_pad * 4 if with_acc else 0))

    if vmem_estimate(D_pad, with_acc=False) <= _RESIDENT_VMEM_BUDGET:
        # Weight fully resident in VMEM: fetched once, reused for every M tile.
        out = pl.pallas_call(
            _resident_kernel,
            out_shape=jax.ShapeDtypeStruct((B_pad, C_pad), out_dtype),
            grid_spec=pltpu.PrefetchScalarGridSpec(
                num_scalar_prefetch=0,
                grid=(B_pad // TM,),
                in_specs=[
                    pl.BlockSpec((TM, D_pad), lambda i: (i, 0)),       # x tile
                    pl.BlockSpec((D_pad, C_pad), lambda i: (0, 0)),    # weight (resident)
                    pl.BlockSpec((1, C_pad), lambda i: (0, 0)),        # bias
                ],
                out_specs=pl.BlockSpec((TM, C_pad), lambda i: (i, 0)),
            ),
            compiler_params=pltpu.CompilerParams(
                dimension_semantics=("parallel",),
                vmem_limit_bytes=_VMEM_LIMIT_BYTES,
            ),
        )(x_in, w_t_pad, b_pad)
    else:
        # K-tiled fallback for very large feature dims.
        with_acc = jnp.dtype(out_dtype) != jnp.dtype(jnp.float32)
        TK = next((tk for tk in (512, 256, 128)
                   if D_pad % tk == 0
                   and vmem_estimate(tk, with_acc) <= _RESIDENT_VMEM_BUDGET),
                  None)
        if TK is None:
            # TODO(synk): add an N (class) grid axis for very wide C_pad so the
            # (TK, C_pad) weight / (TM, C_pad) output tiles fit v7x's 64 MiB VMEM.
            raise NotImplementedError(
                f"C_pad={C_pad} too wide for a single class tile; N-tiling needed.")
        kernel = _ktiled_acc_kernel if with_acc else _ktiled_f32out_kernel
        scratch = [pltpu.VMEM((TM, C_pad), jnp.float32)] if with_acc else []
        out = pl.pallas_call(
            kernel,
            out_shape=jax.ShapeDtypeStruct((B_pad, C_pad), out_dtype),
            grid_spec=pltpu.PrefetchScalarGridSpec(
                num_scalar_prefetch=0,
                grid=(B_pad // TM, D_pad // TK),
                in_specs=[
                    pl.BlockSpec((TM, TK), lambda i, k: (i, k)),       # x tile
                    pl.BlockSpec((TK, C_pad), lambda i, k: (k, 0)),    # weight tile
                    pl.BlockSpec((1, C_pad), lambda i, k: (0, 0)),     # bias
                ],
                out_specs=pl.BlockSpec((TM, C_pad), lambda i, k: (i, 0)),
                scratch_shapes=scratch,
            ),
            compiler_params=pltpu.CompilerParams(
                dimension_semantics=("parallel", "arbitrary"),
                vmem_limit_bytes=_VMEM_LIMIT_BYTES,
            ),
        )(x_in, w_t_pad, b_pad)

    # Slice padded batch rows / class lanes back off.
    return out[:B, :num_classes]


if __name__ == "__main__":
    key = jax.random.PRNGKey(0)
    kx, kw, kb = jax.random.split(key, 3)

    batch, dim, num_classes = 8, 32, 2

    x = jax.random.normal(kx, (batch, dim), dtype=jnp.float32)
    # Deterministic params (mimics nn.Linear's uniform(-1/sqrt(dim), 1/sqrt(dim)))
    bound = 1.0 / jnp.sqrt(jnp.float32(dim))
    w = jax.random.uniform(kw, (num_classes, dim), minval=-bound, maxval=bound,
                           dtype=jnp.float32)
    b = jax.random.uniform(kb, (num_classes,), minval=-bound, maxval=bound,
                           dtype=jnp.float32)

    # One-time, out-of-hot-path weight prep (transpose + pad + bf16 cast).
    w_t_pad, b_pad = prepare_linear_params(w, b)

    # Force the Pallas path even at demo scale (the tiny-problem fast path
    # would otherwise bypass the kernel entirely).
    out = logistic_regression(x, w_t_pad, b_pad, num_classes,
                              allow_fast_path=False)
    out = jax.block_until_ready(out)

    assert out.shape == (batch, num_classes)

    # Loose check against the pure-f32 reference (bf16 operand rounding).
    ref_f32 = x @ w.T + b
    assert jnp.allclose(out, ref_f32, atol=1e-2, rtol=1e-2), \
        float(jnp.max(jnp.abs(out - ref_f32)))

    # Tight check against a reference with the same bf16 operand rounding
    # (accumulation is f32 in both).
    ref_bf16 = (x.astype(jnp.bfloat16).astype(jnp.float32)
                @ w.astype(jnp.bfloat16).astype(jnp.float32).T + b)
    assert jnp.allclose(out, ref_bf16, atol=1e-3, rtol=1e-3), \
        float(jnp.max(jnp.abs(out - ref_bf16)))

    print("KERNEL_OK")
</pallas_src>

<mosaic_0001>
module attributes {stable_mosaic.version = 11 : i64} {
  func.func @_resident_kernel(%arg0: i32, %arg1: memref<16x128xbf16, #tpu.memory_space<vmem>>, %arg2: memref<128x128xbf16, #tpu.memory_space<vmem>>, %arg3: memref<1x128xf32, #tpu.memory_space<vmem>>, %arg4: memref<16x128xf32, #tpu.memory_space<vmem>>) attributes {dimension_semantics = [#tpu.dimension_semantics<parallel>], iteration_bounds = array<i64: 1>, scalar_prefetch = 0 : i64, scratch_operands = 0 : i64, tpu.core_type = #tpu.core_type<tc>, window_params = [{transform_indices = @transform_0, window_bounds = array<i64: 16, 128>}, {pipeline_mode = #tpu.pipeline_mode<synchronous>, transform_indices = @transform_1, window_bounds = array<i64: 128, 128>}, {pipeline_mode = #tpu.pipeline_mode<synchronous>, transform_indices = @transform_2, window_bounds = array<i64: 1, 128>}, {transform_indices = @transform_3, window_bounds = array<i64: 16, 128>}]} {
    %c0 = arith.constant 0 : index
    %c0_0 = arith.constant 0 : index
    %0 = vector.load %arg1[%c0, %c0_0] : memref<16x128xbf16, #tpu.memory_space<vmem>>, vector<16x128xbf16>
    %c0_1 = arith.constant 0 : index
    %c0_2 = arith.constant 0 : index
    %1 = vector.load %arg2[%c0_1, %c0_2] : memref<128x128xbf16, #tpu.memory_space<vmem>>, vector<128x128xbf16>
    %cst = arith.constant dense<0.000000e+00> : vector<16x128xf32>
    %2 = tpu.matmul %0, %1, %cst {dimension_numbers = #tpu.dot_dimension_numbers<[1], [0], [0], [1], [0, 0, 1, 1], [], []>} : vector<16x128xbf16>, vector<128x128xbf16>, vector<16x128xf32> -> vector<16x128xf32>
    %c0_3 = arith.constant 0 : index
    %c0_4 = arith.constant 0 : index
    %3 = vector.load %arg3[%c0_3, %c0_4] : memref<1x128xf32, #tpu.memory_space<vmem>>, vector<1x128xf32>
    %4 = vector.broadcast %3 : vector<1x128xf32> to vector<16x128xf32>
    %5 = arith.addf %2, %4 : vector<16x128xf32>
    %c0_5 = arith.constant 0 : index
    %c0_6 = arith.constant 0 : index
    %6 = vector.load %arg4[%c0_5, %c0_6] : memref<16x128xf32, #tpu.memory_space<vmem>>, vector<16x128xf32>
    tpu.vector_store %arg4[%c0_5, %c0_6], %5 {strides = array<i32>} : memref<16x128xf32, #tpu.memory_space<vmem>>, vector<16x128xf32>,
    return
  }
  func.func @transform_0(%arg0: i32) -> (i32, i32) {
    %c0_i32 = arith.constant 0 : i32
    %c0_i32_0 = arith.constant 0 : i32
    return %arg0, %c0_i32 : i32, i32
  }
  func.func @transform_1(%arg0: i32) -> (i32, i32) {
    %c0_i32 = arith.constant 0 : i32
    %c0_i32_0 = arith.constant 0 : i32
    %c0_i32_1 = arith.constant 0 : i32
    return %c0_i32, %c0_i32_0 : i32, i32
  }
  func.func @transform_2(%arg0: i32) -> (i32, i32) {
    %c0_i32 = arith.constant 0 : i32
    %c0_i32_0 = arith.constant 0 : i32
    %c0_i32_1 = arith.constant 0 : i32
    return %c0_i32, %c0_i32_0 : i32, i32
  }
  func.func @transform_3(%arg0: i32) -> (i32, i32) {
    %c0_i32 = arith.constant 0 : i32
    %c0_i32_0 = arith.constant 0 : i32
    return %arg0, %c0_i32 : i32, i32
  }
}

</mosaic_0001>

<bundles_post_ra>
// kernel: tpu_custom_call.1
= control target key start
LH: loop header
LB: loop body
LE: loop exit
PB: predicated region body
PF: predicated region fallthrough
CT: control target
= control target key end

     0   :  { %8 = vsyncpa [#allocation3], 0  ;;  %s381_s0 = inlined_call_operand.hbm [shape: bf16[16,128], index: 0, kind: input, shape index: {}]   ;;  %s382_s1 = inlined_call_operand.hbm [shape: bf16[128,128], index: 1, kind: input, shape index: {}]   ;;  %s383_s2 = inlined_call_operand.vmem [shape: f32[1,128], index: 2, kind: input, shape index: {}]   ;;  %s384_s3 = inlined_call_operand.hbm [shape: f32[16,128], index: 3, kind: output, shape index: {}]  }
   0x1   :  { %9 = vsyncpa [#allocation6], 0 }
   0x2   :  { %10 = vsyncpa [#allocation4], 0  ;;  %s313_s12 = smov [#allocation2]   ;;  %s241_s16 = scalar_lea.hbm %s381_s0, 128 }
   0x3   :  { %s16_s13 = sshll.u32 %s313_s12, 4  ;;  %p242_p0 = scmp.ne.s32.totalorder %s381_s0, %s241_s16  ;;  %s17_s13 = int_to_ptr.vmem [resolvable:$true] %s16_s13 }
   0x4   :  { %p245_p1 = scmp.lt.u32.totalorder %s241_s16, %s381_s0 }
   0x6   :  { %p247_p2 = pnand %p245_p1, %p242_p0 }
   0x8   :  { %250 = shalt.err (!%p247_p2)
}
   0x9   :  { %s251_s21 = scalar_lea.vmem %s17_s13, 128  ;;  %p256_p4 = scmp.lt.s32.totalorder %s17_s13, %s17_s13 }
   0xa   :  { %p252_p3 = scmp.ne.s32.totalorder %s17_s13, %s251_s21  ;;  %p257_p5 = scmp.lt.s32.totalorder %s251_s21, %s251_s21 }
   0xc   :  { %p258_p6 = por %p257_p5, %p256_p4 }
   0xe   :  { %p259_p7 = pnand %p258_p6, %p252_p3 }
  0x10   :  { %262 = shalt.err (!%p259_p7)
}
  0x11   :  { %s314_s22 = smov 64   ;;  %s315_s23 = smov 4  }
  0x12   :  { %22 = dma.hbm_to_vmem [thread:$0]  %s381_s0, 128, %s17_s13, [#allocation3], %s314_s22, %s314_s22, %s315_s23  }
  0x13   :  { %s316_s26 = smov [#allocation5]   ;;  %s263_s30 = scalar_lea.hbm %s382_s1, 1024 }
  0x14   :  { %s28_s27 = sshll.u32 %s316_s26, 4  ;;  %p264_p8 = scmp.ne.s32.totalorder %s382_s1, %s263_s30  ;;  %s29_s27 = int_to_ptr.vmem [resolvable:$true] %s28_s27 }
  0x15   :  { %p267_p9 = scmp.lt.u32.totalorder %s263_s30, %s382_s1 }
  0x17   :  { %p269_p10 = pnand %p267_p9, %p264_p8 }
  0x19   :  { %272 = shalt.err (!%p269_p10)
}
  0x1a   :  { %s273_s8 = scalar_lea.vmem %s29_s27, 1024  ;;  %p278_p12 = scmp.lt.s32.totalorder %s29_s27, %s29_s27 }
  0x1b   :  { %p274_p11 = scmp.ne.s32.totalorder %s29_s27, %s273_s8  ;;  %p279_p13 = scmp.lt.s32.totalorder %s273_s8, %s273_s8 }
  0x1d   :  { %p280_p0 = por %p279_p13, %p278_p12 }
  0x1f   :  { %p281_p1 = pnand %p280_p0, %p274_p11 }
  0x21   :  { %284 = shalt.err (!%p281_p1)
}
  0x22   :  { %34 = dma.hbm_to_vmem [thread:$0]  %s382_s1, 1024, %s29_s27, [#allocation6], %s314_s22, %s314_s22, %s315_s23  }
  0x23   :  { %307 = dma.done.wait [#allocation3], 128  }
  0x24   :  { %308 = vsyncadd [#allocation3], 4294967168 }
  0x25   :  { %309 = dma.done.wait [#allocation6], 1024  }
  0x26   :  { %310 = vsyncadd [#allocation6], 4294966272  ;;  %v317_v0 = vmov 0.0   ;;  %vm318_vm0 = vmmov 0   ;;  %v232_v1 = vld [vmem:[#allocation5] sm:$0xff]   ;;  %v233_v2 = vld [vmem:[#allocation5 + $0x8] sm:$0xff]  }
  0x27   :  { %203 = vmatprep.subr.bf16.mxu0 %v317_v0  ;;  %219 = vmatprep.mubr.msk.bf16.mxu0 %vm318_vm0, %v317_v0  ;;  %v234_v3 = vld [vmem:[#allocation5 + $0x10] sm:$0xff]   ;;  %v235_v4 = vld [vmem:[#allocation5 + $0x18] sm:$0xff]   ;;  %v236_v5 = vld [vmem:[#allocation5 + $0x20] sm:$0xff]   ;;  %s319_s11 = smov [#allocation7]  }
  0x28   :  { %204 = vmatpush3.bf16.msra.mxu0 %v232_v1  ;;  %v237_v6 = vld [vmem:[#allocation5 + $0x28] sm:$0xff]   ;;  %v238_v7 = vld [vmem:[#allocation5 + $0x30] sm:$0xff]   ;;  %v239_v8 = vld [vmem:[#allocation5 + $0x38] sm:$0xff]   ;;  %s171_s12 = sshll.u32 %s319_s11, 4  ;;  %s172_s12 = int_to_ptr.vmem [resolvable:$true] %s171_s12 }
  0x29   :  { %205 = vmatprep.subr.bf16.mxu0 %v317_v0  ;;  %v240_v9 = vld [vmem:[#allocation2] sm:$0xff]   ;;  %s285_s13 = scalar_lea.vmem %s172_s12, 256  ;;  %p290_p3 = scmp.lt.s32.totalorder %s172_s12, %s172_s12 }
  0x2a   :  { %v184_v10 = vld [vmem:[%s383_s2] ss:$0 sm:$0xff]  ;;  %p286_p2 = scmp.ne.s32.totalorder %s172_s12, %s285_s13  ;;  %p291_p4 = scmp.lt.s32.totalorder %s285_s13, %s285_s13 }
  0x2c   :  { %206 = vmatpush3.bf16.msra.mxu0 %v233_v2  ;;  %p292_p5 = por %p291_p4, %p290_p3 }
  0x2d   :  { %207 = vmatprep.subr.bf16.mxu0 %v317_v0 }
  0x2e   :  { %p293_p6 = pnand %p292_p5, %p286_p2 }
  0x30   :  { %208 = vmatpush3.bf16.msra.mxu0 %v234_v3 }
  0x31   :  { %209 = vmatprep.subr.bf16.mxu0 %v317_v0 }
  0x34   :  { %210 = vmatpush3.bf16.msra.mxu0 %v235_v4 }
  0x35   :  { %211 = vmatprep.subr.bf16.mxu0 %v317_v0 }
  0x38   :  { %212 = vmatpush3.bf16.msra.mxu0 %v236_v5 }
  0x39   :  { %213 = vmatprep.subr.bf16.mxu0 %v317_v0 }
  0x3c   :  { %214 = vmatpush3.bf16.msra.mxu0 %v237_v6 }
  0x3d   :  { %215 = vmatprep.subr.bf16.mxu0 %v317_v0 }
  0x40   :  { %216 = vmatpush3.bf16.msra.mxu0 %v238_v7 }
  0x41   :  { %217 = vmatprep.subr.bf16.mxu0 %v317_v0 }
  0x44   :  { %218 = vmatpush3.bf16.msra.mxu0 %v239_v8 }
  0x47   :  { %220 = vmatmul.mubr.bf16.vlgmr.msra.gmra.mrb[0].mxu0 %v240_v9 }
 0x11a   :  { %v157_v11 = vpop.f32.mrb[0].mxu0 }
 0x11b   :  { %v158_v12 = vadd.f32 %v184_v10, %v157_v11  ;;  %v221_v13 = vpop.f32.mrb[1].mxu0 }
 0x11c   :  { %v160_v14 = vpop.f32.mrb[2].mxu0 }
 0x11d   :  { %164 = vst [vmem:[#allocation7] sm:$0xff] %v158_v12  ;;  %v161_v15 = vadd.f32 %v184_v10, %v160_v14  ;;  %v222_v16 = vpop.f32.mrb[3].mxu0 }
 0x11f   :  { %165 = vst [vmem:[#allocation7 + $0x8] sm:$0xff] %v161_v15 }
 0x120   :  { %296 = shalt.err (!%p293_p6)
}
 0x121   :  { %s297_s15 = scalar_lea.hbm %s384_s3, 256 }
 0x122   :  { %p298_p7 = scmp.ne.s32.totalorder %s384_s3, %s297_s15  ;;  %p301_p8 = scmp.lt.u32.totalorder %s297_s15, %s384_s3 }
 0x124   :  { %p303_p9 = pnand %p301_p8, %p298_p7 }
 0x126   :  { %306 = shalt.err (!%p303_p9)
}
 0x127   :  { %s320_s20 = smov 128   ;;  %s321_s21 = smov 8  }
 0x128   :  { %177 = dma.vmem_to_hbm [thread:$0]  %s172_s12, 256, %s384_s3, [#allocation4], %s320_s20, %s320_s20, %s321_s21  }
 0x129   :  { %311 = dma.done.wait [#allocation4], 256  }
 0x12a   :  { %312 = vsyncadd [#allocation4], 4294967040 }
 0x12b   :  { %181 = vsyncpa [#allocation3], 1 }
 0x12c   :  { %182 = vsyncpa [#allocation6], 1 }
 0x12d   :  { %183 = vsyncpa [#allocation4], 1 }

</bundles_post_ra>
